<compile_context>
chip_gen: v5e
topology: v5e:2x2
jax: 0.10.0
libtpu: 0.0.40
codegen_flags: <defaults>
</compile_context>

<pallas_src>
import math

import jax
import jax.numpy as jnp
from jax import lax
from jax.experimental import pallas as pl
from jax.experimental.pallas import tpu as pltpu

# dot_general dimension numbers: contract last dim of LHS with last dim of RHS (x @ W.T without
# materializing W.T), and plain row-by-column matmul.
_DN_LAST_LAST = (((1,), (1,)), ((), ()))
_DN_LAST_FIRST = (((1,), (0,)), ((), ()))

# Scoped-VMEM request: above v5e's 16 MiB default, at the 32 MiB scoped default of v6e/v7x,
# and well below v7x's 64 MiB physical VMEM.
_VMEM_LIMIT_BYTES = 32 * 1024 * 1024

_DEFAULT_MAX_Q_TILE = 512


# --------------------------------------------------------------------------------------
# Kernels
# --------------------------------------------------------------------------------------

def _kv_projection_kernel(x_ref, wk_ref, wv_ref, bk_ref, bv_ref, k_ref, v_ref):
    """K = X @ Wk.T + bk, V = X @ Wv.T + bv — executed exactly once per forward call.

    Two separate matmuls (not a fused [Wk; Wv]) so that for D < 128 neither output needs a
    mid-vreg lane slice; each output is a full-width, lane-dense store. MXU operands are the
    compute dtype (bf16 by default); accumulation + bias add are f32.
    """
    x = x_ref[...]                                                     # (M, D)
    k = lax.dot_general(x, wk_ref[...], _DN_LAST_LAST,
                        preferred_element_type=jnp.float32)            # (M, D) f32
    v = lax.dot_general(x, wv_ref[...], _DN_LAST_LAST,
                        preferred_element_type=jnp.float32)            # (M, D) f32
    k_ref[...] = (k + bk_ref[...]).astype(k_ref.dtype)
    v_ref[...] = (v + bv_ref[...]).astype(v_ref.dtype)


def _attention_kernel(g_ref, k_ref, v_ref, wq_ref, bq_ref, o_ref):
    """One q-row tile: q-projection, scores, softmax, attn @ V.

    K/V are projected once per call (separate kernel) and stay VMEM-resident across q tiles,
    so nothing M-sized is recomputed per grid step.
    """
    # Q projection: contract last dims (g @ Wq.T without materializing Wq.T). MXU operands are
    # the compute dtype (bf16 by default); accumulate f32. 1/sqrt(D) is pre-folded into Wq/bq.
    q = lax.dot_general(g_ref[...], wq_ref[...], _DN_LAST_LAST,
                        preferred_element_type=jnp.float32)            # (TQ, D) f32
    q = q + bq_ref[...]

    # Scores (TQ, M): q cast back to the MXU compute dtype, f32 accumulation.
    s = lax.dot_general(q.astype(k_ref.dtype), k_ref[...], _DN_LAST_LAST,
                        preferred_element_type=jnp.float32)            # (TQ, M) f32

    # Numerically stable softmax over the last axis — all in f32.
    m = jnp.max(s, axis=-1, keepdims=True)
    p = jnp.exp(s - m)
    denom = jnp.sum(p, axis=-1, keepdims=True)
    r = pl.reciprocal(denom, approx=True)                              # EUP slot, ~free
    r = r * (2.0 - denom * r)                                          # one Newton step -> ~f32
    p = p * r

    # Attention-weighted values: (TQ, M) @ (M, D); natural MXU orientation, no transpose.
    o = lax.dot_general(p.astype(v_ref.dtype), v_ref[...], _DN_LAST_FIRST,
                        preferred_element_type=jnp.float32)            # (TQ, D) f32
    o_ref[...] = o.astype(o_ref.dtype)
    # TODO(synk): for large M, add a KV grid axis (last, "arbitrary") with online-softmax
    # m/l/acc VMEM scratch instead of materializing the full (TQ, M) score tile.


# --------------------------------------------------------------------------------------
# Host-side wrappers
# --------------------------------------------------------------------------------------

def prepare_cross_attention_params(wq, wk, wv, bq, bk, bv, *, compute_dtype=jnp.bfloat16):
    """One-time parameter preparation. Call ONCE at init, not per forward.

    Folds the 1/sqrt(D) softmax scale into Wq/bq and casts MXU-operand weights to the compute
    dtype (bf16 by default — the native MXU rate on v5e/v6e/v7x). Biases stay f32 since they
    are added to f32 accumulators inside the kernels.
    """
    d = wq.shape[0]
    scale = 1.0 / math.sqrt(float(d))
    return {
        "wq": (wq * scale).astype(compute_dtype),                 # (D, D) PyTorch layout
        "wk": wk.astype(compute_dtype),                           # (D, D)
        "wv": wv.astype(compute_dtype),                           # (D, D)
        "bq": (bq * scale).reshape(1, d).astype(jnp.float32),     # (1, D)
        "bk": bk.reshape(1, d).astype(jnp.float32),               # (1, D)
        "bv": bv.reshape(1, d).astype(jnp.float32),               # (1, D)
        "compute_dtype": compute_dtype,
    }


def _project_kv(params, global_embed):
    """Run the K/V projection kernel once per call (full-array blocks, no grid)."""
    m, d = global_embed.shape
    cdt = params["compute_dtype"]
    x = global_embed.astype(cdt)
    # TODO(synk): tile over M with a grid for very large M; at that point the attention side
    # should switch to the flash-style streaming variant anyway.
    return pl.pallas_call(
        _kv_projection_kernel,
        out_shape=(jax.ShapeDtypeStruct((m, d), cdt),
                   jax.ShapeDtypeStruct((m, d), cdt)),
        compiler_params=pltpu.CompilerParams(vmem_limit_bytes=_VMEM_LIMIT_BYTES),
    )(x, params["wk"], params["wv"], params["bk"], params["bv"])


def _choose_q_tile(n, max_tile):
    """Prefer a single full block or a divisor of N (no padding / output slicing)."""
    if n <= max_tile:
        return n, n                                  # full-dim block is always layout-legal
    for t in (512, 384, 256, 128):
        if t <= max_tile and n % t == 0:
            return t, n
    t = max_tile
    return t, -(-n // t) * t                         # rare fallback: pad N up, slice after


def _q_axis_semantics(num_tiles):
    kind = ""
    try:
        kind = jax.devices()[0].device_kind.lower()
    except Exception:
        pass
    if num_tiles >= 2 and ("v7" in kind or "tpu7" in kind):
        # v7x has 2 TensorCores per chip; only CORE_PARALLEL actually shards a grid axis
        # across them ("parallel" vs "arbitrary" has near-zero measured impact).
        return (pltpu.CORE_PARALLEL,)
    return (pltpu.PARALLEL,)


def _build_attention_call(n_rows, tq, m, d, out_dtype, *, single_buffer_residents, semantics):
    num_tiles = n_rows // tq

    def resident(shape):
        # Constant index map -> operand stays VMEM-resident across all q tiles.
        # Buffered(1): don't double-buffer operands that never change between grid steps.
        kwargs = {"pipeline_mode": pl.Buffered(1)} if single_buffer_residents else {}
        return pl.BlockSpec(shape, lambda i: (0,) * len(shape), **kwargs)

    return pl.pallas_call(
        _attention_kernel,
        out_shape=jax.ShapeDtypeStruct((n_rows, d), out_dtype),
        grid=(num_tiles,),
        in_specs=[
            pl.BlockSpec((tq, d), lambda i: (i, 0)),   # q rows: streamed per grid step
            resident((m, d)),                          # K (projected once, resident)
            resident((m, d)),                          # V (projected once, resident)
            resident((d, d)),                          # Wq (scale pre-folded)
            resident((1, d)),                          # bq (scale pre-folded)
        ],
        out_specs=pl.BlockSpec((tq, d), lambda i: (i, 0)),
        compiler_params=pltpu.CompilerParams(
            dimension_semantics=semantics,
            vmem_limit_bytes=_VMEM_LIMIT_BYTES,
        ),
    )


def cross_attention_apply(params, gaussian_embeds, global_embed, *,
                          max_q_tile=_DEFAULT_MAX_Q_TILE):
    """Forward pass using pre-prepared params (see prepare_cross_attention_params)."""
    n, d = gaussian_embeds.shape
    m, d2 = global_embed.shape
    assert d == d2, "embed_dim mismatch"

    # K/V projection: once per call, NOT once per q tile.
    k, v = _project_kv(params, global_embed)

    cdt = params["compute_dtype"]
    g = gaussian_embeds.astype(cdt)

    tq, n_rows = _choose_q_tile(n, max_q_tile)
    if n_rows != n:
        g = jnp.pad(g, ((0, n_rows - n), (0, 0)))     # rare fallback only

    semantics = _q_axis_semantics(n_rows // tq)
    out_dtype = gaussian_embeds.dtype
    args = (g, k, v, params["wq"], params["bq"])

    try:
        fn = _build_attention_call(n_rows, tq, m, d, out_dtype,
                                   single_buffer_residents=True, semantics=semantics)
        out = jax.block_until_ready(fn(*args))
    except Exception:
        # Conservative fallback (identical math): default double-buffered residents and an
        # "arbitrary" grid axis — always lowers, even if Buffered(1)/CORE_PARALLEL don't.
        fn = _build_attention_call(n_rows, tq, m, d, out_dtype,
                                   single_buffer_residents=False,
                                   semantics=(pltpu.ARBITRARY,))
        out = fn(*args)

    if n_rows != n:
        out = out[:n]
    return out


def cross_attention(gaussian_embeds, global_embed, wq, wk, wv, bq, bk, bv, *,
                    compute_dtype=jnp.bfloat16):
    """Convenience one-shot wrapper. For repeated forwards, call
    prepare_cross_attention_params() once and reuse it with cross_attention_apply() so the
    weight prep (scale folding / casts) is not redone every call."""
    params = prepare_cross_attention_params(wq, wk, wv, bq, bk, bv, compute_dtype=compute_dtype)
    return cross_attention_apply(params, gaussian_embeds, global_embed)


def cross_attention_ref(gaussian_embeds, global_embed, wq, wk, wv, bq, bk, bv):
    """Plain-JAX f32 reference mirroring the PyTorch forward."""
    d = wq.shape[1]
    scale = 1.0 / math.sqrt(float(d))
    q = gaussian_embeds @ wq.T + bq
    k = global_embed @ wk.T + bk
    v = global_embed @ wv.T + bv
    attn = jax.nn.softmax(q @ k.T * scale, axis=-1)
    return attn @ v


if __name__ == "__main__":
    embed_dim = 64   # module default
    N = 8            # gaussian embeddings (query rows)
    M = 8            # global embeddings (key/value rows)

    key = jax.random.PRNGKey(0)
    ks = jax.random.split(key, 8)

    # Deterministic synthetic parameters (PyTorch Linear shapes: weight (D, D), bias (D,)).
    bound = 1.0 / (embed_dim ** 0.5)
    wq = jax.random.uniform(ks[0], (embed_dim, embed_dim), jnp.float32, -bound, bound)
    wk = jax.random.uniform(ks[1], (embed_dim, embed_dim), jnp.float32, -bound, bound)
    wv = jax.random.uniform(ks[2], (embed_dim, embed_dim), jnp.float32, -bound, bound)
    bq = jax.random.uniform(ks[3], (embed_dim,), jnp.float32, -bound, bound)
    bk = jax.random.uniform(ks[4], (embed_dim,), jnp.float32, -bound, bound)
    bv = jax.random.uniform(ks[5], (embed_dim,), jnp.float32, -bound, bound)

    gaussian_embeds = jax.random.normal(ks[6], (N, embed_dim), jnp.float32)
    global_embed = jax.random.normal(ks[7], (M, embed_dim), jnp.float32)

    ref = cross_attention_ref(gaussian_embeds, global_embed, wq, wk, wv, bq, bk, bv)

    # Default fast path: bf16 MXU operands, f32 accumulation + f32 softmax.
    params = prepare_cross_attention_params(wq, wk, wv, bq, bk, bv)   # prep ONCE
    out = jax.block_until_ready(cross_attention_apply(params, gaussian_embeds, global_embed))
    assert out.shape == (N, embed_dim)
    assert out.dtype == gaussian_embeds.dtype
    assert jnp.allclose(out, ref, atol=3e-2, rtol=3e-2), "bf16 Pallas output mismatch vs reference"

    # Full-f32 path: tight numerical check of the kernel logic.
    params_f32 = prepare_cross_attention_params(wq, wk, wv, bq, bk, bv, compute_dtype=jnp.float32)
    out_f32 = jax.block_until_ready(
        cross_attention_apply(params_f32, gaussian_embeds, global_embed))
    assert jnp.allclose(out_f32, ref, atol=1e-4, rtol=1e-4), "f32 Pallas output mismatch vs reference"

    print("KERNEL_OK")
</pallas_src>

<mosaic_0001>
module attributes {stable_mosaic.version = 11 : i64} {
  func.func @_kv_projection_kernel(%arg0: memref<8x64xbf16, #tpu.memory_space<vmem>>, %arg1: memref<64x64xbf16, #tpu.memory_space<vmem>>, %arg2: memref<64x64xbf16, #tpu.memory_space<vmem>>, %arg3: memref<1x64xf32, #tpu.memory_space<vmem>>, %arg4: memref<1x64xf32, #tpu.memory_space<vmem>>, %arg5: memref<8x64xbf16, #tpu.memory_space<vmem>>, %arg6: memref<8x64xbf16, #tpu.memory_space<vmem>>) attributes {dimension_semantics = [], scalar_prefetch = 0 : i64, scratch_operands = 0 : i64, tpu.core_type = #tpu.core_type<tc>} {
    %c0 = arith.constant 0 : index
    %c0_0 = arith.constant 0 : index
    %0 = vector.load %arg0[%c0, %c0_0] : memref<8x64xbf16, #tpu.memory_space<vmem>>, vector<8x64xbf16>
    %c0_1 = arith.constant 0 : index
    %c0_2 = arith.constant 0 : index
    %1 = vector.load %arg1[%c0_1, %c0_2] : memref<64x64xbf16, #tpu.memory_space<vmem>>, vector<64x64xbf16>
    %cst = arith.constant dense<0.000000e+00> : vector<8x64xf32>
    %2 = tpu.matmul %0, %1, %cst {dimension_numbers = #tpu.dot_dimension_numbers<[1], [1], [0], [0], [0, 0, 1, 0], [], []>} : vector<8x64xbf16>, vector<64x64xbf16>, vector<8x64xf32> -> vector<8x64xf32>
    %c0_3 = arith.constant 0 : index
    %c0_4 = arith.constant 0 : index
    %3 = vector.load %arg2[%c0_3, %c0_4] : memref<64x64xbf16, #tpu.memory_space<vmem>>, vector<64x64xbf16>
    %cst_5 = arith.constant dense<0.000000e+00> : vector<8x64xf32>
    %4 = tpu.matmul %0, %3, %cst_5 {dimension_numbers = #tpu.dot_dimension_numbers<[1], [1], [0], [0], [0, 0, 1, 0], [], []>} : vector<8x64xbf16>, vector<64x64xbf16>, vector<8x64xf32> -> vector<8x64xf32>
    %c0_6 = arith.constant 0 : index
    %c0_7 = arith.constant 0 : index
    %5 = vector.load %arg3[%c0_6, %c0_7] : memref<1x64xf32, #tpu.memory_space<vmem>>, vector<1x64xf32>
    %6 = vector.broadcast %5 : vector<1x64xf32> to vector<8x64xf32>
    %7 = arith.addf %2, %6 : vector<8x64xf32>
    %8 = arith.truncf %7 : vector<8x64xf32> to vector<8x64xbf16>
    %c0_8 = arith.constant 0 : index
    %c0_9 = arith.constant 0 : index
    %9 = vector.load %arg5[%c0_8, %c0_9] : memref<8x64xbf16, #tpu.memory_space<vmem>>, vector<8x64xbf16>
    tpu.vector_store %arg5[%c0_8, %c0_9], %8 {strides = array<i32>} : memref<8x64xbf16, #tpu.memory_space<vmem>>, vector<8x64xbf16>,
    %c0_10 = arith.constant 0 : index
    %c0_11 = arith.constant 0 : index
    %10 = vector.load %arg4[%c0_10, %c0_11] : memref<1x64xf32, #tpu.memory_space<vmem>>, vector<1x64xf32>
    %11 = vector.broadcast %10 : vector<1x64xf32> to vector<8x64xf32>
    %12 = arith.addf %4, %11 : vector<8x64xf32>
    %13 = arith.truncf %12 : vector<8x64xf32> to vector<8x64xbf16>
    %c0_12 = arith.constant 0 : index
    %c0_13 = arith.constant 0 : index
    %14 = vector.load %arg6[%c0_12, %c0_13] : memref<8x64xbf16, #tpu.memory_space<vmem>>, vector<8x64xbf16>
    tpu.vector_store %arg6[%c0_12, %c0_13], %13 {strides = array<i32>} : memref<8x64xbf16, #tpu.memory_space<vmem>>, vector<8x64xbf16>,
    return
  }
}

</mosaic_0001>

<bundles_post_ra>
// kernel: tpu_custom_call.1
= control target key start
LH: loop header
LB: loop body
LE: loop exit
PB: predicated region body
PF: predicated region fallthrough
CT: control target
= control target key end

     0   :  { %12 = vsyncpa [#allocation3], 0  ;;  %s480_s0 = inlined_call_operand.hbm [shape: bf16[8,64], index: 0, kind: input, shape index: {}]   ;;  %s481_s1 = inlined_call_operand.hbm [shape: bf16[64,64], index: 1, kind: input, shape index: {}]   ;;  %s482_s2 = inlined_call_operand.hbm [shape: bf16[64,64], index: 2, kind: input, shape index: {}]   ;;  %s483_s3 = inlined_call_operand.vmem [shape: f32[1,64], index: 3, kind: input, shape index: {}]   ;;  %s484_s4 = inlined_call_operand.vmem [shape: f32[1,64], index: 4, kind: input, shape index: {}]   ;;  %s485_s5 = inlined_call_operand.hbm [shape: bf16[8,64], index: 5, kind: output, shape index: {0}]   ;;  %s486_s6 = inlined_call_operand.hbm [shape: bf16[8,64], index: 6, kind: output, shape index: {1}]  }
   0x1   :  { %13 = vsyncpa [#allocation6], 0 }
   0x2   :  { %14 = vsyncpa [#allocation4], 0  ;;  %s31_s23 = sshll.u32 %s481_s1, 4  ;;  %s32_s23 = int_to_ptr.hbm [resolvable:$true] %s31_s23 }
   0x3   :  { %15 = vsyncpa [#allocation10], 0  ;;  %s407_s24 = smov [#allocation5]   ;;  %s21_s28 = sshll.u32 %s480_s0, 4  ;;  %s22_s28 = int_to_ptr.hbm [resolvable:$true] %s21_s28 }
   0x4   :  { %s33_s25 = sshll.u32 %s407_s24, 4  ;;  %s408_s29 = smov 64   ;;  %s34_s25 = int_to_ptr.vmem [resolvable:$true] %s33_s25 }
   0x5   :  { %s409_s30 = smov 4   ;;  %s410_s7 = smov [#allocation2]  }
   0x6   :  { %39 = dma.hbm_to_vmem [thread:$0]  %s32_s23, 512, %s34_s25, [#allocation6], %s408_s29, %s408_s29, %s409_s30  }
   0x7   :  { %s23_s8 = sshll.u32 %s410_s7, 4  ;;  %s44_s11 = sshll.u32 %s482_s2, 4  ;;  %s24_s8 = int_to_ptr.vmem [resolvable:$true] %s23_s8  ;;  %s45_s11 = int_to_ptr.hbm [resolvable:$true] %s44_s11 }
   0x8   :  { %26 = dma.hbm_to_vmem [thread:$0]  %s22_s28, 64, %s24_s8, [#allocation3]  }
   0x9   :  { %s411_s1 = smov [#allocation7]  }
   0xa   :  { %s46_s12 = sshll.u32 %s411_s1, 4  ;;  %s47_s12 = int_to_ptr.vmem [resolvable:$true] %s46_s12 }
   0xb   :  { %52 = dma.hbm_to_vmem [thread:$0]  %s45_s11, 512, %s47_s12, [#allocation6], %s408_s29, %s408_s29, %s409_s30  }
   0xc   :  { %399 = dma.done.wait [#allocation3], 64  }
   0xd   :  { %400 = vsyncadd [#allocation3], 4294967232 }
   0xe   :  { %401 = dma.done.wait [#allocation6], 1024  }
   0xf   :  { %402 = vsyncadd [#allocation6], 4294966272  ;;  %vm111_vm0 = vcmask 523264   ;;  %v265_v0 = vld [vmem:[#allocation5 + $0x18] sm:$0xff]  ;;  %v264_v4 = vld [vmem:[#allocation5 + $0x10] sm:$0xff]  ;;  %s412_s15 = smov [#allocation8]  }
  0x10   :  { %v269_v1 = vld [vmem:[#allocation7 + $0x18] sm:$0xff]  ;;  %v125_v2 = vsel %vm111_vm0, %v265_v0, 0  ;;  %v268_v5 = vld [vmem:[#allocation7 + $0x10] sm:$0xff]  ;;  %v122_v6 = vsel %vm111_vm0, %v264_v4, 0  ;;  %v263_v8 = vld [vmem:[#allocation5 + $0x8] sm:$0xff]  ;;  %s199_s16 = sshll.u32 %s412_s15, 4  ;;  %s200_s16 = int_to_ptr.vmem [resolvable:$true] %s199_s16 }
  0x11   :  { %v177_v3 = vsel %vm111_vm0, %v269_v1, 0  ;;  %131 = vmatpush.bf16.xpose.msra.mxu0 %v125_v2  ;;  %v174_v7 = vsel %vm111_vm0, %v268_v5, 0  ;;  %v267_v9 = vld [vmem:[#allocation7 + $0x8] sm:$0xff]  ;;  %v119_v10 = vsel %vm111_vm0, %v263_v8, 0  ;;  %v262_v12 = vld [vmem:[#allocation5] sm:$0xff]  ;;  %s201_s19 = sshll.u32 %s485_s5, 4  ;;  %s202_s19 = int_to_ptr.hbm [resolvable:$true] %s201_s19 }
  0x12   :  { %183 = vmatpush.bf16.xpose.msra.mxu1 %v177_v3  ;;  %v171_v11 = vsel %vm111_vm0, %v267_v9, 0  ;;  %v266_v13 = vld [vmem:[#allocation7] sm:$0xff]  ;;  %v116_v14 = vsel %vm111_vm0, %v262_v12, 0  ;;  %v70_v16 = vld [vmem:[#allocation2] sm:$0xf]  ;;  %s413_s20 = smov [#allocation9]  }
  0x13   :  { %v168_v15 = vsel %vm111_vm0, %v266_v13, 0  ;;  %v277_v17 = vld [vmem:[%s483_s3] ss:$0 sm:$0xff]  ;;  %s210_s21 = sshll.u32 %s413_s20, 4  ;;  %s212_s3 = sshll.u32 %s486_s6, 4  ;;  %vm141_vm1 = vcmask 519168   ;;  %s211_s21 = int_to_ptr.vmem [resolvable:$true] %s210_s21  ;;  %s213_s3 = int_to_ptr.hbm [resolvable:$true] %s212_s3 }
  0x14   :  { %v278_v18 = vld [vmem:[%s484_s4] ss:$0 sm:$0xff] }
  0x19   :  { %132 = vmatpush.bf16.xpose.msra.mxu0 %v122_v6 }
  0x1a   :  { %184 = vmatpush.bf16.xpose.msra.mxu1 %v174_v7 }
  0x21   :  { %133 = vmatpush.bf16.xpose.msra.mxu0 %v119_v10 }
  0x22   :  { %185 = vmatpush.bf16.xpose.msra.mxu1 %v171_v11 }
  0x29   :  { %134 = vmatpush.bf16.xpose.msra.mxu0 %v116_v14 }
  0x2a   :  { %186 = vmatpush.bf16.xpose.msra.mxu1 %v168_v15 }
  0x30   :  { %244 = vmatmul.msk.bf16.vlgmr.msra.gmra.mxu0 %vm111_vm0, %v70_v16 }
  0x31   :  { %261 = vmatmul.msk.bf16.vlgmr.msra.gmra.mxu1 %vm111_vm0, %v70_v16 }
  0xad   :  { %v136_v19 = vpop.f32.mrf.mxu0 }
  0xae   :  { %v188_v20 = vpop.f32.mrf.mxu1  ;;  %v137_v21 = vadd.f32 %v277_v17, %v136_v19 }
  0xaf   :  { %v189_v22 = vadd.f32 %v278_v18, %v188_v20 }
  0xb0   :  { %v140_v23 = vpack.c.bf16 %v137_v21, %v137_v21 }
  0xb1   :  { %v192_v24 = vpack.c.bf16 %v189_v22, %v189_v22 }
  0xb2   :  { %142 = vst.msk [vmem:[#allocation8] sm:$0xf] %vm141_vm1, %v140_v23 }
  0xb3   :  { %204 = dma.vmem_to_hbm [thread:$0]  %s200_s16, 64, %s202_s19, [#allocation4]   ;;  %193 = vst.msk [vmem:[#allocation9] sm:$0xf] %vm141_vm1, %v192_v24 }
  0xb4   :  { %215 = dma.vmem_to_hbm [thread:$0]  %s211_s21, 64, %s213_s3, [#allocation10]  }
  0xb5   :  { %v138_v25 = vpop.f32.mrf.mxu0 }
  0xb6   :  { %v190_v26 = vpop.f32.mrf.mxu1 }
  0xb7   :  { %403 = dma.done.wait [#allocation4], 64  }
  0xb8   :  { %404 = vsyncadd [#allocation4], 4294967232 }
  0xb9   :  { %405 = dma.done.wait [#allocation10], 64  }
  0xba   :  { %406 = vsyncadd [#allocation10], 4294967232 }
  0xbb   :  { %224 = vsyncpa [#allocation3], 1 }
  0xbc   :  { %225 = vsyncpa [#allocation6], 1 }
  0xbd   :  { %226 = vsyncpa [#allocation4], 1 }
  0xbe   :  { %227 = vsyncpa [#allocation10], 1 }

</bundles_post_ra>
